<compile_context>
chip_gen: v7x
topology: tpu7x:2x2x1
jax: 0.10.0
libtpu: 0.0.40
codegen_flags: <defaults>
</compile_context>

<pallas_src>
import functools

import jax
import jax.numpy as jnp
from jax.experimental import pallas as pl
from jax.experimental.pallas import tpu as pltpu


def _round_up(x: int, m: int) -> int:
    return ((x + m - 1) // m) * m


def _resident_spec(shape):
    """Full-array resident block, constant index_map, single-buffered."""
    try:
        return pl.BlockSpec(shape, lambda i: (0, 0), pipeline_mode=pl.Buffered(1))
    except (TypeError, AttributeError):
        # older jax without pipeline_mode / Buffered — fall back to default buffering
        return pl.BlockSpec(shape, lambda i: (0, 0))


def _default_hidden_pad() -> int:
    """256 for the 2x256x256 MXUs (v6e/v7x), 128 for 128-wide MXUs (v5e and older)."""
    try:
        kind = jax.devices()[0].device_kind.lower()
        if "v3" in kind or "v4" in kind or "v5" in kind:
            return 128
        return 256
    except Exception:
        return 128


# ----------------------------------------------------------------------------
# Fused Pallas kernel: whole MLP in one call, activation stays in VMEM
# ----------------------------------------------------------------------------
def _fused_mlp_kernel(*refs, num_hidden: int, skip_connections: bool, compute_dtype):
    # refs = (x_ref, w0, b0, w1, b1, ..., w_final, b_final, o_ref)
    x_ref = refs[0]
    o_ref = refs[-1]
    wb = refs[1:-1]

    # Feed the first matmul directly in the compute dtype (no f32 round trip).
    lhs = x_ref[...].astype(compute_dtype)          # (tm, K0)
    x_skip = None
    for i in range(num_hidden):
        w = wb[2 * i][...]                          # (K_i, N_i), compute_dtype
        b = wb[2 * i + 1][...]                      # (1, N_i), f32
        y = jnp.dot(lhs, w, preferred_element_type=jnp.float32) + b
        h = y * jax.nn.sigmoid(y)                   # SiLU in f32 (exp on EUP)
        if skip_connections and i % 2 == 0:
            if x_skip is not None:
                h, x_skip = h + x_skip, h
            else:
                x_skip = h
        lhs = h.astype(compute_dtype)

    # final layer: plain linear, identity activation (output width lane-padded)
    wf = wb[2 * num_hidden][...]
    bf = wb[2 * num_hidden + 1][...]
    y = jnp.dot(lhs, wf, preferred_element_type=jnp.float32) + bf
    o_ref[...] = y.astype(o_ref.dtype)


def fused_mlp_pallas(x, weights_t, biases, *, skip_connections: bool = False,
                     tm: int = 512, vmem_limit_bytes=None):
    """x: (M, K) f32. weights_t[i]: (K_i, N_i) (pre-transposed, weight-norm folded,
    zero-padded). biases[i]: (N_i,) f32. Returns (M, N_last_padded) f32."""
    M, K = x.shape
    num_hidden = len(weights_t) - 1
    n_pad = weights_t[-1].shape[1]
    compute_dtype = weights_t[0].dtype

    if skip_connections and num_hidden > 0:
        even_widths = [weights_t[i].shape[1] for i in range(0, num_hidden, 2)]
        assert all(w == even_widths[0] for w in even_widths), (
            "skip_connections requires matching output widths at even hidden layers")

    # clamp batch tile to the (8-rounded) batch size, keep it a multiple of 8
    tm_eff = max(8, min(_round_up(tm, 8), _round_up(M, 8)))
    # ensure >=2 grid steps when the batch allows it, so v7x's 2nd TC gets work
    # (one extra ~0.35us grid step on 1-TC chips — negligible)
    if pl.cdiv(M, tm_eff) == 1 and M > 16:
        tm_eff = max(8, _round_up(pl.cdiv(M, 2), 8))
    grid = (pl.cdiv(M, tm_eff),)

    in_specs = [pl.BlockSpec((tm_eff, K), lambda i: (i, 0))]     # streamed x tile
    flat_inputs = [x]
    for w, b in zip(weights_t, biases):
        b2 = b.reshape(1, -1).astype(jnp.float32)
        in_specs.append(_resident_spec(w.shape))                 # resident, single-buffered
        in_specs.append(_resident_spec(b2.shape))
        flat_inputs.append(w)
        flat_inputs.append(b2)

    if vmem_limit_bytes is None:
        weight_bytes = sum(int(w.size) * w.dtype.itemsize for w in weights_t)
        bias_bytes = sum(_round_up(int(b.size), 128) * 4 for b in biases)
        io_bytes = 2 * tm_eff * K * x.dtype.itemsize + 2 * tm_eff * n_pad * 4
        max_w = max(int(w.shape[1]) for w in weights_t)
        act_bytes = 4 * tm_eff * max_w * 4                       # live activation / temps
        want = weight_bytes + bias_bytes + io_bytes + act_bytes + (4 << 20)
        try:
            cap = int(pltpu.get_tpu_info().vmem_capacity_bytes) * 7 // 8
        except Exception:
            cap = 100 << 20
        # TODO(synk): if `want > cap`, switch the oversized layer(s) to N/K tiling
        # (pl.ANY weights + emit_pipeline) instead of clamping and hoping.
        vmem_limit_bytes = min(max(want, 32 << 20), cap)

    kernel = functools.partial(
        _fused_mlp_kernel,
        num_hidden=num_hidden,
        skip_connections=skip_connections,
        compute_dtype=compute_dtype,
    )

    return pl.pallas_call(
        kernel,
        out_shape=jax.ShapeDtypeStruct((M, n_pad), jnp.float32),
        grid_spec=pltpu.PrefetchScalarGridSpec(
            num_scalar_prefetch=0,
            grid=grid,
            in_specs=in_specs,
            out_specs=pl.BlockSpec((tm_eff, n_pad), lambda i: (i, 0)),
        ),
        compiler_params=pltpu.CompilerParams(
            dimension_semantics=("parallel",),
            vmem_limit_bytes=int(vmem_limit_bytes),
        ),
    )(*flat_inputs)


# ----------------------------------------------------------------------------
# Parameter init / one-time inference prep (weight-norm fold, transpose, pad)
# ----------------------------------------------------------------------------
def init_params(key, in_features, layer_size_list):
    """Raw parameters mirroring the module's shapes.
    Hidden i: weight_v (out_i, in_i), weight_g (out_i, 1), bias (out_i,).
    Final:    weight (out_last, in_last), bias (out_last,)  (no weight norm)."""
    nr_layers = len(layer_size_list) - 1
    params = {"hidden": [], "final": None}
    fan_in = in_features
    for i in range(nr_layers):
        out_f = layer_size_list[i]
        key, wk = jax.random.split(key)
        limit = (6.0 / (fan_in + out_f)) ** 0.5
        v = jax.random.uniform(wk, (out_f, fan_in), jnp.float32, -limit, limit)
        g = jnp.ones((out_f, 1), jnp.float32)
        b = jnp.zeros((out_f,), jnp.float32)
        params["hidden"].append((v, g, b))
        fan_in = out_f
    out_f = layer_size_list[-1]
    key, wk = jax.random.split(key)
    limit = (6.0 / (fan_in + out_f)) ** 0.5
    w = jax.random.uniform(wk, (out_f, fan_in), jnp.float32, -limit, limit)
    b = jnp.zeros((out_f,), jnp.float32)
    params["final"] = (w, b)
    return params


def prepare_inference_params(params, *, compute_dtype=jnp.bfloat16,
                             lane_pad=128, hidden_pad=None):
    """One-time prep hoisted out of the forward path:
       - fold weight norm: w_eff = g * v * rsqrt(sum(v^2, axis=1))  (no eps, like torch)
       - transpose to (in, out) so the kernel computes x @ W
       - zero-pad hidden widths to a multiple of `hidden_pad` (MXU-width alignment;
         exact: padded units stay identically zero) and the final output width to a
         multiple of `lane_pad` (unmasked vst stores)
       - cast MXU weight operands to `compute_dtype` (bf16 default; accumulation,
         biases and SiLU stay f32)."""
    if hidden_pad is None:
        hidden_pad = _default_hidden_pad()
    weights_t, biases = [], []
    prev_pad = None
    for (v, g, b) in params["hidden"]:
        inv_norm = jax.lax.rsqrt(jnp.sum(v * v, axis=1, keepdims=True))
        w_eff = (g * v * inv_norm).T                       # (in, out), f32
        true_in, true_out = w_eff.shape
        in_pad = true_in if prev_pad is None else prev_pad
        out_pad = _round_up(true_out, hidden_pad)
        w_eff = jnp.pad(w_eff, ((0, in_pad - true_in), (0, out_pad - true_out)))
        weights_t.append(w_eff.astype(compute_dtype))
        biases.append(jnp.pad(b.astype(jnp.float32), (0, out_pad - true_out)))
        prev_pad = out_pad
    w, b = params["final"]
    w_t = w.T                                              # (in, out)
    true_in, true_out = w_t.shape
    in_pad = true_in if prev_pad is None else prev_pad
    n_pad = _round_up(true_out, lane_pad)
    w_t = jnp.pad(w_t, ((0, in_pad - true_in), (0, n_pad - true_out)))
    weights_t.append(w_t.astype(compute_dtype))
    biases.append(jnp.pad(b.astype(jnp.float32), (0, n_pad - true_out)))
    return {"weights_t": weights_t, "biases": biases, "n_out": true_out}


def forward(prepared, x, *, skip_connections: bool = False, tm: int = 512,
            vmem_limit_bytes=None):
    """Equivalent of FullyConnectedFlexiLayerSizeArchCore.forward (conv_layers=False)."""
    out = fused_mlp_pallas(x, prepared["weights_t"], prepared["biases"],
                           skip_connections=skip_connections, tm=tm,
                           vmem_limit_bytes=vmem_limit_bytes)
    return out[:, :prepared["n_out"]]


def forward_ref(params, x, *, skip_connections: bool = False):
    """Pure-jnp reference (f32) for correctness check."""
    x_skip = None
    for i, (v, g, b) in enumerate(params["hidden"]):
        norm = jnp.sqrt(jnp.sum(v * v, axis=1, keepdims=True))
        w_eff = g * v / norm
        y = x @ w_eff.T + b
        x = y * jax.nn.sigmoid(y)
        if skip_connections and i % 2 == 0:
            if x_skip is not None:
                x, x_skip = x + x_skip, x
            else:
                x_skip = x
    w, b = params["final"]
    return x @ w.T + b


# ----------------------------------------------------------------------------
if __name__ == "__main__":
    key = jax.random.PRNGKey(0)

    batch = 64
    in_features = 128
    layer_size_list = [128, 128, 64]   # two SiLU hidden layers + identity final layer

    key, xk = jax.random.split(key)
    x = jax.random.normal(xk, (batch, in_features), jnp.float32)
    params = init_params(key, in_features, layer_size_list)

    ref = forward_ref(params, x, skip_connections=False)

    # f32-weight path: bit-level check against the pure-jnp reference
    prepared_f32 = prepare_inference_params(params, compute_dtype=jnp.float32)
    out = jax.block_until_ready(forward(prepared_f32, x, skip_connections=False))
    assert out.shape == (batch, layer_size_list[-1])
    assert jnp.allclose(out, ref, atol=1e-5, rtol=1e-5), "f32 mismatch vs reference"

    # f32-weight path, skip connections enabled
    out_sc = jax.block_until_ready(forward(prepared_f32, x, skip_connections=True))
    ref_sc = forward_ref(params, x, skip_connections=True)
    assert jnp.allclose(out_sc, ref_sc, atol=1e-5, rtol=1e-5), "skip-conn mismatch"

    # default path: bf16 MXU operands, f32 accumulation (looser tolerance)
    prepared_bf16 = prepare_inference_params(params)
    out_bf16 = jax.block_until_ready(forward(prepared_bf16, x, skip_connections=False))
    assert out_bf16.shape == (batch, layer_size_list[-1])
    assert bool(jnp.all(jnp.isfinite(out_bf16))), "bf16 path produced non-finite values"
    assert jnp.allclose(out_bf16, ref, atol=1e-1, rtol=1e-1), "bf16 path far from reference"

    print("KERNEL_OK")
</pallas_src>

<mosaic_0001>
module attributes {stable_mosaic.version = 11 : i64} {
  func.func @_fused_mlp_kernel(%arg0: i32, %arg1: memref<32x128xf32, #tpu.memory_space<vmem>>, %arg2: memref<128x256xf32, #tpu.memory_space<vmem>>, %arg3: memref<1x256xf32, #tpu.memory_space<vmem>>, %arg4: memref<256x256xf32, #tpu.memory_space<vmem>>, %arg5: memref<1x256xf32, #tpu.memory_space<vmem>>, %arg6: memref<256x128xf32, #tpu.memory_space<vmem>>, %arg7: memref<1x128xf32, #tpu.memory_space<vmem>>, %arg8: memref<32x128xf32, #tpu.memory_space<vmem>>) attributes {dimension_semantics = [#tpu.dimension_semantics<parallel>], iteration_bounds = array<i64: 2>, scalar_prefetch = 0 : i64, scratch_operands = 0 : i64, tpu.core_type = #tpu.core_type<tc>, window_params = [{transform_indices = @transform_0, window_bounds = array<i64: 32, 128>}, {pipeline_mode = #tpu.pipeline_mode<synchronous>, transform_indices = @transform_1, window_bounds = array<i64: 128, 256>}, {pipeline_mode = #tpu.pipeline_mode<synchronous>, transform_indices = @transform_2, window_bounds = array<i64: 1, 256>}, {pipeline_mode = #tpu.pipeline_mode<synchronous>, transform_indices = @transform_3, window_bounds = array<i64: 256, 256>}, {pipeline_mode = #tpu.pipeline_mode<synchronous>, transform_indices = @transform_4, window_bounds = array<i64: 1, 256>}, {pipeline_mode = #tpu.pipeline_mode<synchronous>, transform_indices = @transform_5, window_bounds = array<i64: 256, 128>}, {pipeline_mode = #tpu.pipeline_mode<synchronous>, transform_indices = @transform_6, window_bounds = array<i64: 1, 128>}, {transform_indices = @transform_7, window_bounds = array<i64: 32, 128>}]} {
    %c0 = arith.constant 0 : index
    %c0_0 = arith.constant 0 : index
    %0 = vector.load %arg1[%c0, %c0_0] : memref<32x128xf32, #tpu.memory_space<vmem>>, vector<32x128xf32>
    %c0_1 = arith.constant 0 : index
    %c0_2 = arith.constant 0 : index
    %1 = vector.load %arg2[%c0_1, %c0_2] : memref<128x256xf32, #tpu.memory_space<vmem>>, vector<128x256xf32>
    %c0_3 = arith.constant 0 : index
    %c0_4 = arith.constant 0 : index
    %2 = vector.load %arg3[%c0_3, %c0_4] : memref<1x256xf32, #tpu.memory_space<vmem>>, vector<1x256xf32>
    %cst = arith.constant dense<0.000000e+00> : vector<32x256xf32>
    %3 = tpu.matmul %0, %1, %cst {dimension_numbers = #tpu.dot_dimension_numbers<[1], [0], [0], [1], [0, 0, 1, 1], [], []>} : vector<32x128xf32>, vector<128x256xf32>, vector<32x256xf32> -> vector<32x256xf32>
    %4 = vector.broadcast %2 : vector<1x256xf32> to vector<32x256xf32>
    %5 = arith.addf %3, %4 : vector<32x256xf32>
    %6 = arith.negf %5 : vector<32x256xf32>
    %7 = math.exp %6 : vector<32x256xf32>
    %cst_5 = arith.constant 1.000000e+00 : f32
    %8 = vector.broadcast %cst_5 : f32 to vector<32x256xf32>
    %9 = arith.addf %8, %7 : vector<32x256xf32>
    %10 = arith.divf %8, %9 : vector<32x256xf32>
    %11 = arith.mulf %5, %10 : vector<32x256xf32>
    %c0_6 = arith.constant 0 : index
    %c0_7 = arith.constant 0 : index
    %12 = vector.load %arg4[%c0_6, %c0_7] : memref<256x256xf32, #tpu.memory_space<vmem>>, vector<256x256xf32>
    %c0_8 = arith.constant 0 : index
    %c0_9 = arith.constant 0 : index
    %13 = vector.load %arg5[%c0_8, %c0_9] : memref<1x256xf32, #tpu.memory_space<vmem>>, vector<1x256xf32>
    %cst_10 = arith.constant dense<0.000000e+00> : vector<32x256xf32>
    %14 = tpu.matmul %11, %12, %cst_10 {dimension_numbers = #tpu.dot_dimension_numbers<[1], [0], [0], [1], [0, 0, 1, 1], [], []>} : vector<32x256xf32>, vector<256x256xf32>, vector<32x256xf32> -> vector<32x256xf32>
    %15 = vector.broadcast %13 : vector<1x256xf32> to vector<32x256xf32>
    %16 = arith.addf %14, %15 : vector<32x256xf32>
    %17 = arith.negf %16 : vector<32x256xf32>
    %18 = math.exp %17 : vector<32x256xf32>
    %cst_11 = arith.constant 1.000000e+00 : f32
    %19 = vector.broadcast %cst_11 : f32 to vector<32x256xf32>
    %20 = arith.addf %19, %18 : vector<32x256xf32>
    %21 = arith.divf %19, %20 : vector<32x256xf32>
    %22 = arith.mulf %16, %21 : vector<32x256xf32>
    %c0_12 = arith.constant 0 : index
    %c0_13 = arith.constant 0 : index
    %23 = vector.load %arg6[%c0_12, %c0_13] : memref<256x128xf32, #tpu.memory_space<vmem>>, vector<256x128xf32>
    %c0_14 = arith.constant 0 : index
    %c0_15 = arith.constant 0 : index
    %24 = vector.load %arg7[%c0_14, %c0_15] : memref<1x128xf32, #tpu.memory_space<vmem>>, vector<1x128xf32>
    %cst_16 = arith.constant dense<0.000000e+00> : vector<32x128xf32>
    %25 = tpu.matmul %22, %23, %cst_16 {dimension_numbers = #tpu.dot_dimension_numbers<[1], [0], [0], [1], [0, 0, 1, 1], [], []>} : vector<32x256xf32>, vector<256x128xf32>, vector<32x128xf32> -> vector<32x128xf32>
    %26 = vector.broadcast %24 : vector<1x128xf32> to vector<32x128xf32>
    %27 = arith.addf %25, %26 : vector<32x128xf32>
    %c0_17 = arith.constant 0 : index
    %c0_18 = arith.constant 0 : index
    %28 = vector.load %arg8[%c0_17, %c0_18] : memref<32x128xf32, #tpu.memory_space<vmem>>, vector<32x128xf32>
    tpu.vector_store %arg8[%c0_17, %c0_18], %27 {strides = array<i32>} : memref<32x128xf32, #tpu.memory_space<vmem>>, vector<32x128xf32>,
    return
  }
  func.func @transform_0(%arg0: i32) -> (i32, i32) {
    %c0_i32 = arith.constant 0 : i32
    %c0_i32_0 = arith.constant 0 : i32
    return %arg0, %c0_i32 : i32, i32
  }
  func.func @transform_1(%arg0: i32) -> (i32, i32) {
    %c0_i32 = arith.constant 0 : i32
    %c0_i32_0 = arith.constant 0 : i32
    %c0_i32_1 = arith.constant 0 : i32
    return %c0_i32, %c0_i32_0 : i32, i32
  }
  func.func @transform_2(%arg0: i32) -> (i32, i32) {
    %c0_i32 = arith.constant 0 : i32
    %c0_i32_0 = arith.constant 0 : i32
    %c0_i32_1 = arith.constant 0 : i32
    return %c0_i32, %c0_i32_0 : i32, i32
  }
  func.func @transform_3(%arg0: i32) -> (i32, i32) {
    %c0_i32 = arith.constant 0 : i32
    %c0_i32_0 = arith.constant 0 : i32
    %c0_i32_1 = arith.constant 0 : i32
    return %c0_i32, %c0_i32_0 : i32, i32
  }
  func.func @transform_4(%arg0: i32) -> (i32, i32) {
    %c0_i32 = arith.constant 0 : i32
    %c0_i32_0 = arith.constant 0 : i32
    %c0_i32_1 = arith.constant 0 : i32
    return %c0_i32, %c0_i32_0 : i32, i32
  }
  func.func @transform_5(%arg0: i32) -> (i32, i32) {
    %c0_i32 = arith.constant 0 : i32
    %c0_i32_0 = arith.constant 0 : i32
    %c0_i32_1 = arith.constant 0 : i32
    return %c0_i32, %c0_i32_0 : i32, i32
  }
  func.func @transform_6(%arg0: i32) -> (i32, i32) {
    %c0_i32 = arith.constant 0 : i32
    %c0_i32_0 = arith.constant 0 : i32
    %c0_i32_1 = arith.constant 0 : i32
    return %c0_i32, %c0_i32_0 : i32, i32
  }
  func.func @transform_7(%arg0: i32) -> (i32, i32) {
    %c0_i32 = arith.constant 0 : i32
    %c0_i32_0 = arith.constant 0 : i32
    return %arg0, %c0_i32 : i32, i32
  }
}

</mosaic_0001>

<bundles_post_ra>
// kernel: tpu_custom_call.1
= control target key start
LH: loop header
LB: loop body
LE: loop exit
PB: predicated region body
PF: predicated region fallthrough
CT: control target
= control target key end

     0   :  { %12 = vsyncpa [#allocation3], 0  ;;  %s1902_s0 = inlined_call_operand.hbm [shape: f32[64,128], index: 0, kind: input, shape index: {}]   ;;  %s1903_s1 = inlined_call_operand.hbm [shape: f32[128,256], index: 1, kind: input, shape index: {}]   ;;  %s1904_s2 = inlined_call_operand.vmem [shape: f32[1,256], index: 2, kind: input, shape index: {}]   ;;  %s1905_s3 = inlined_call_operand.hbm [shape: f32[256,256], index: 3, kind: input, shape index: {}]   ;;  %s1906_s4 = inlined_call_operand.vmem [shape: f32[1,256], index: 4, kind: input, shape index: {}]   ;;  %s1907_s5 = inlined_call_operand.hbm [shape: f32[256,128], index: 5, kind: input, shape index: {}]   ;;  %s1908_s6 = inlined_call_operand.vmem [shape: f32[1,128], index: 6, kind: input, shape index: {}]   ;;  %s1909_s7 = inlined_call_operand.hbm [shape: f32[64,128], index: 7, kind: output, shape index: {}]  }
   0x1   :  { %14 = vsyncpa [#allocation3 + $0x1], 0 }
   0x2   :  { %15 = vsyncpa [#allocation6], 0 }
   0x3   :  { %16 = vsyncpa [#allocation9], 0 }
   0x4   :  { %17 = vsyncpa [#allocation4], 0 }
   0x5   :  { %19 = vsyncpa [#allocation4 + $0x1], 0  ;;  %s1602_s24 = smov 0   ;;  %s1604_s25 = smov 0  }
   0x6   :  { %s1606_s26 = smov 0   ;;  %s1608_s27 = smov 0  }
   0x7 LB: > { %s1623_s28 = sadd.s32 4294967295, %s1548_s27   ;;  %s1001_s29 = sadd.s32 4294967294, %s1548_s27   ;;  %s1548_s27 = sphi %s1608_s27, %s1935_s27   ;;  %s1544_s26 = sphi %s1606_s26, %s1934_s26   ;;  %s1540_s25 = sphi %s1604_s25, %s1933_s25   ;;  %s1536_s24 = sphi %s1602_s24, %s1932_s24  }
   0x8   : > { %p45_p0 = scmp.ne.s32.totalorder %s1540_s25, %s1536_s24  ;;  %p1910_p1 = scmp.eq.s32.totalorder %s1623_s28, 0 }
   0x9   : > { %p201_p3 = scmp.eq.s32.totalorder %s1001_s29, 1  ;;  %p1002_p5 = scmp.ge.s32.totalorder %s1548_s27, 1 }
   0xa   : > { %p1632_p4 = por %p1910_p1, %p45_p0  ;;  %p208_p7 = scmp.lt.s32.totalorder %s1548_s27, 3 }
   0xb   : > { %p1637_p6 = por %p201_p3, %p45_p0  ;;  %s1550_s10 = smov [#allocation5]  }
   0xc   : > { %s1914_s30 = scalar_select %p1632_p4, 1, 0 }
   0xd   : > { %s1915_s8 = scalar_select %p1637_p6, 1, 0 }
   0xe   : > { %p1642_p8 = pnand %p1002_p5, %p208_p7  ;;  %s220_s11 = sshll.u32 %s1550_s10, 4  ;;  %s1646_s11 = int_to_ptr.vmem [resolvable:$true] %s220_s11 }
   0xf   : > { %1916 = sst [smem:[#allocation15_spill]] %s1915_s8  ;;  %s1551_s13 = smov [#allocation7]  }
  0x10   : > { %s1917_s9 = scalar_select %p1642_p8, 1, 0 }
  0x11   : > { %p1228_p9 = pneg %p1642_p8  ;;  %s236_s14 = sshll.u32 %s1551_s13, 4  ;;  %s1657_s14 = int_to_ptr.vmem [resolvable:$true] %s236_s14 }
  0x12   : > { %s1552_s15 = smov [#allocation8]   ;;  %s1360_s19 = scalar_lea.hbm %s1903_s1, 4096 }
  0x13   : > { %p1653_p11 = pnand %p1228_p9, %p1910_p1  ;;  %s1659_s16 = sshll.u32 %s1552_s15, 4  ;;  %s253_s16 = int_to_ptr.vmem [resolvable:$true] %s1659_s16 }
  0x14   : > { %p1361_p12 = scmp.ne.s32.totalorder %s1903_s1, %s1360_s19  ;;  %p1367_p5 = scmp.lt.u32.totalorder %s1360_s19, %s1903_s1 }
  0x15   : > { %p1669_p13 = pneg %p1653_p11 }
  0x17   : > { %p1363_p0 = pnand %p1669_p13, %p1361_p12 }
  0x19   : > { %p1364_p3 = pneg %p1363_p0 }
  0x1b   : > { %p1369_p7 = pnand %p1367_p5, %p1364_p3 }
  0x1d   : > { %1372 = shalt.err (!%p1369_p7)
}
  0x1e   : > { %s1373_s10 = scalar_lea.vmem %s1646_s11, 4096  ;;  %p1381_p2 = scmp.lt.s32.totalorder %s1646_s11, %s1646_s11 }
  0x1f   : > { %p1374_p9 = scmp.ne.s32.totalorder %s1646_s11, %s1373_s10  ;;  %p1382_p6 = scmp.lt.s32.totalorder %s1373_s10, %s1373_s10 }
  0x21   : > { %p1376_p10 = pnand %p1374_p9, %p1669_p13  ;;  %p1383_p12 = por %p1382_p6, %p1381_p2 }
  0x23   : > { %p1377_p1 = pneg %p1376_p10 }
  0x25   : > { %p1384_p0 = pnand %p1383_p12, %p1377_p1 }
  0x27   : > { %1387 = shalt.err (!%p1384_p0)
}
  0x28   : > { %s1553_s13 = smov 256   ;;  %s1554_s15 = smov 16  }
  0x29   : > { %1231 = dma.hbm_to_vmem [thread:$0]  (!%p1653_p11), %s1903_s1, 4096, %s1646_s11, [#allocation6], %s1553_s13, %s1553_s13, %s1554_s15  }
  0x2a   : > { %s1388_s21 = scalar_lea.hbm %s1905_s3, 8192 }
  0x2b   : > { %p1389_p2 = scmp.ne.s32.totalorder %s1905_s3, %s1388_s21  ;;  %p1395_p10 = scmp.lt.u32.totalorder %s1388_s21, %s1905_s3 }
  0x2d   : > { %p1391_p1 = pnand %p1389_p2, %p1669_p13 }
  0x2f   : > { %p1392_p6 = pneg %p1391_p1 }
  0x31   : > { %p1397_p3 = pnand %p1395_p10, %p1392_p6 }
  0x33   : > { %1400 = shalt.err (!%p1397_p3)
}
  0x34   : > { %s1401_s11 = scalar_lea.vmem %s1657_s14, 8192  ;;  %p1409_p12 = scmp.lt.s32.totalorder %s1657_s14, %s1657_s14 }
  0x35   : > { %p1402_p5 = scmp.ne.s32.totalorder %s1657_s14, %s1401_s11  ;;  %p1410_p0 = scmp.lt.s32.totalorder %s1401_s11, %s1401_s11 }
  0x37   : > { %p1404_p7 = pnand %p1402_p5, %p1669_p13  ;;  %p1411_p2 = por %p1410_p0, %p1409_p12 }
  0x39   : > { %p1405_p9 = pneg %p1404_p7 }
  0x3b   : > { %p1412_p1 = pnand %p1411_p2, %p1405_p9 }
  0x3d   : > { %1415 = shalt.err (!%p1412_p1)
}
  0x3e   : > { %1234 = dma.hbm_to_vmem [thread:$0]  (!%p1653_p11), %s1905_s3, 8192, %s1657_s14, [#allocation6], %s1553_s13, %s1553_s13, %s1554_s15  }
  0x3f   : > { %s1416_s20 = scalar_lea.hbm %s1907_s5, 4096 }
  0x40   : > { %p1417_p6 = scmp.ne.s32.totalorder %s1907_s5, %s1416_s20  ;;  %p1423_p5 = scmp.lt.u32.totalorder %s1416_s20, %s1907_s5 }
  0x42   : > { %p1419_p10 = pnand %p1417_p6, %p1669_p13 }
  0x44   : > { %p1420_p3 = pneg %p1419_p10 }
  0x46   : > { %p1425_p7 = pnand %p1423_p5, %p1420_p3 }
  0x48   : > { %1428 = shalt.err (!%p1425_p7)
}
  0x49   : > { %s1429_s11 = scalar_lea.vmem %s253_s16, 4096  ;;  %p1437_p2 = scmp.lt.s32.totalorder %s253_s16, %s253_s16 }
  0x4a   : > { %p1430_p9 = scmp.ne.s32.totalorder %s253_s16, %s1429_s11  ;;  %p1438_p1 = scmp.lt.s32.totalorder %s1429_s11, %s1429_s11 }
  0x4c   : > { %p1432_p12 = pnand %p1430_p9, %p1669_p13  ;;  %p1439_p4 = por %p1438_p1, %p1437_p2 }
  0x4e   : > { %p1433_p0 = pneg %p1432_p12 }
  0x50   : > { %p1440_p8 = pnand %p1439_p4, %p1433_p0 }
  0x52   : > { %1443 = shalt.err (!%p1440_p8)
}
  0x53   : > { %s1555_s14 = smov 128   ;;  %s1556_s22 = smov 8  }
  0x54   : > { %1237 = dma.hbm_to_vmem [thread:$0]  (!%p1653_p11), %s1907_s5, 4096, %s253_s16, [#allocation9], %s1555_s14, %s1555_s14, %s1556_s22  }
  0x55   : > { %s1736_s8 = sadd.s32 1, %s1548_s27   ;;  %s32_s18 = sadd.s32 1, %s1544_s26 }
  0x56   : > { %s29_s17 = ssub.s32 %s1548_s27, %s1736_s8  ;;  %p39_p8 = scmp.ne.s32.totalorder %s1544_s26, %s1540_s25 }
  0x57   : > { %p30_p4 = scmp.eq.s32.totalorder %s29_s17, 0  ;;  %p40_p13 = scmp.eq.s32.totalorder %s1548_s27, 0 }
  0x58   : > { %p1249_p6 = scmp.lt.s32.totalorder %s1548_s27, 2  ;;  %p1920_p3 = scmp.eq.s32.totalorder %s1623_s28, 1 }
  0x59   : > { %s1746_s19 = scalar_select %p30_p4, %s1544_s26, %s32_s18  }
  0x5a   : > { %p41_p10 = por %p40_p13, %p39_p8  ;;  %p1750_p5 = por %p1920_p3, %p39_p8 }
  0x5b   : > { %s269_s20 = sand.u32 1, %s1544_s26   ;;  %s1038_s21 = sshll.u32 %s1548_s27, 9 }
  0x5c   : > { %s1007_s16 = sshll.u32 %s269_s20, 5  ;;  %s1759_s10 = scalar_lea.hbm %s1902_s0, %s1038_s21 }
  0x5d   : > { %s273_s11 = scalar_lea.vmem [#allocation2], %s1007_s16  ;;  %p1761_p11 = pnand %p1249_p6, %p41_p10 }
  0x5e   : > { %s280_s13 = sshll.u32 %s273_s11, 4  ;;  %s1767_s17 = scalar_lea.sflag [#allocation3], %s269_s20  ;;  %s1765_s13 = int_to_ptr.vmem [resolvable:$true] %s280_s13 }
  0x5f   : > { %s1444_s18 = scalar_lea.hbm %s1759_s10, 512  ;;  %p1446_p9 = pneg %p1761_p11 }
  0x60   : > { %p1445_p7 = scmp.ne.s32.totalorder %s1759_s10, %s1444_s18  ;;  %s1449_s23 = scalar_lea.hbm %s1902_s0, 1024 }
  0x61   : > { %p1450_p2 = scmp.lt.u32.totalorder %s1759_s10, %s1902_s0  ;;  %p1451_p1 = scmp.lt.u32.totalorder %s1449_s23, %s1444_s18 }
  0x62   : > { %p1447_p12 = pnand %p1446_p9, %p1445_p7  ;;  %p1453_p8 = scmp.lt.u32.totalorder %s1444_s18, %s1759_s10 }
  0x63   : > { %p1452_p4 = por %p1451_p1, %p1450_p2 }
  0x64   : > { %p1448_p0 = pneg %p1447_p12 }
  0x65   : > { %p1454_p13 = por %p1453_p8, %p1452_p4 }
  0x67   : > { %p1455_p6 = pnand %p1454_p13, %p1448_p0 }
  0x69   : > { %1458 = shalt.err (!%p1455_p6)
}
  0x6a   : > { %s1459_s20 = scalar_lea.vmem %s1765_s13, 512  ;;  %s1557_s21 = smov [#allocation2]  }
  0x6b   : > { %p1460_p10 = scmp.ne.s32.totalorder %s1765_s13, %s1459_s20  ;;  %s1464_s16 = sshll.u32 %s1557_s21, 4  ;;  %s1465_s16 = int_to_ptr.vmem [resolvable:$false] %s1464_s16 }
  0x6c   : > { %s1466_s29 = scalar_lea.vmem %s1465_s16, 1024  ;;  %p1467_p12 = scmp.lt.s32.totalorder %s1765_s13, %s1465_s16 }
  0x6d   : > { %p1462_p3 = pnand %p1460_p10, %p1446_p9  ;;  %p1468_p2 = scmp.lt.s32.totalorder %s1466_s29, %s1459_s20 }
  0x6f   : > { %p1463_p7 = pneg %p1462_p3  ;;  %p1469_p1 = por %p1468_p2, %p1467_p12 }
  0x71   : > { %p1470_p4 = pnand %p1469_p1, %p1463_p7 }
  0x73   : > { %1473 = shalt.err (!%p1470_p4)
}
  0x74   : > { %1241 = dma.hbm_to_vmem [thread:$0]  (!%p1761_p11), %s1759_s10, 512, %s1765_s13, %s1767_s17, %s1555_s14, %s1555_s14, %s1556_s22  }
  0x75   : > { %p1923_p9 = scmp.ne.s32.totalorder %s1917_s9, 0 }
  0x76   : > { %s1801_s18 = sand.u32 (!%p1923_p9), 1, %s1540_s25   ;;  %p1924_p0 = scmp.ne.s32.totalorder (!%p1923_p9), %s1914_s30, 0 }
  0x77   : > { %292 = sbr.rel (%p1923_p9) target bundleno = 904 (0x388), region = 48  ;;  %s1011_s23 = sshll.u32 (!%p1923_p9), %s1801_s18, 5 }
  0x78   : > { %s295_s11 = scalar_lea.sflag (!%p1923_p9), [#allocation3], %s1801_s18  ;;  %s1807_s15 = scalar_lea.vmem (!%p1923_p9), [#allocation2], %s1011_s23 }
  0x7e   : > { %1519 = dma.done.wait (%p1924_p0), %s295_s11, 512  }
  0x7f   : > { %1521 = vsyncadd (%p1924_p0), %s295_s11, 4294966784  ;;  %p1925_p11 = scmp.eq.s32.totalorder %s1623_s28, 0 }
  0x81   : > { %1523 = dma.done.wait (%p1925_p11), [#allocation6], 12288   ;;  %p1926_p8 = pmov %p1925_p11 }
  0x83   : > { %1525 = vsyncadd (%p1926_p8), [#allocation6], 4294955008  ;;  %p1927_p13 = pmov %p1926_p8 }
  0x84   : > { %p1928_p6 = pmov %p1926_p8 }
  0x85   : > { %1527 = dma.done.wait (%p1927_p13), [#allocation9], 4096  }
  0x86   : > { %1529 = vsyncadd (%p1928_p6), [#allocation9], 4294963200  ;;  %v1558_v0 = vmov 0.0   ;;  %v348_v1 = vld [vmem:[#allocation5 + $0x8] sm:$0xff]  ;;  %v350_v2 = vld [vmem:[#allocation5 + $0x18] sm:$0xff]  ;;  %s340_s17 = scalar_lea.vmem [#allocation10], %s1011_s23 }
  0x87   : > { %455 = vmatprep.mubr.f32.mxu0 %v1558_v0  ;;  %v347_v3 = vld [vmem:[#allocation5] sm:$0xff]  ;;  %v1084_v4 = vpack.c.bf16 %v350_v2, %v348_v1  ;;  %v349_v5 = vld [vmem:[#allocation5 + $0x10] sm:$0xff]  ;;  %v352_v6 = vld [vmem:[#allocation5 + $0x28] sm:$0xff]  ;;  %s899_s20 = sshll.u32 %s340_s17, 4  ;;  %s1039_s21 = sshll.u32 %s1623_s28, 9  ;;  %s1853_s20 = int_to_ptr.vmem [resolvable:$true] %s899_s20 }
  0x88   : > { %v354_v7 = vld [vmem:[#allocation5 + $0x38] sm:$0xff]  ;;  %v1086_v8 = vpack.c.bf16 %v349_v5, %v347_v3  ;;  %v351_v10 = vld [vmem:[#allocation5 + $0x20] sm:$0xff]  ;;  %v353_v11 = vld [vmem:[#allocation5 + $0x30] sm:$0xff]  ;;  %s1858_s23 = scalar_lea.hbm %s1909_s7, %s1039_s21  ;;  %s886_s11 = scalar_lea.sflag [#allocation4], %s1801_s18 }
  0x89   : > { %v1088_v9 = vpack.c.bf16 %v354_v7, %v352_v6  ;;  %v356_v12 = vld [vmem:[#allocation5 + $0x48] sm:$0xff]  ;;  %1085 = vmatprep.subr.bf16.mxu0 %v1084_v4  ;;  %v358_v13 = vld [vmem:[#allocation5 + $0x58] sm:$0xff]  ;;  %v1090_v14 = vpack.c.bf16 %v353_v11, %v351_v10  ;;  %v355_v16 = vld [vmem:[#allocation5 + $0x40] sm:$0xff]  ;;  %s1559_s28 = smov [#allocation10]  }
  0x8a   : > { %1087 = vmatpush1.bf16.msra.mxu0 %v1086_v8  ;;  %v1092_v15 = vpack.c.bf16 %v358_v13, %v356_v12  ;;  %v357_v17 = vld [vmem:[#allocation5 + $0x50] sm:$0xff]  ;;  %v360_v18 = vld [vmem:[#allocation5 + $0x68] sm:$0xff]  ;;  %v362_v19 = vld [vmem:[#allocation5 + $0x78] sm:$0xff]  ;;  %s1478_s30 = sshll.u32 %s1559_s28, 4  ;;  %s1479_s30 = int_to_ptr.vmem [resolvable:$false] %s1478_s30 }
  0x8b   : > { %1089 = vmatprep.subr.bf16.mxu0 %v1088_v9  ;;  %v1094_v20 = vpack.c.bf16 %v357_v17, %v355_v16  ;;  %v1096_v21 = vpack.c.bf16 %v362_v19, %v360_v18  ;;  %v359_v22 = vld [vmem:[#allocation5 + $0x60] sm:$0xff]  ;;  %v361_v23 = vld [vmem:[#allocation5 + $0x70] sm:$0xff]  ;;  %v364_v24 = vld [vmem:[#allocation5 + $0x88] sm:$0xff]  ;;  %s1480_s9 = scalar_lea.vmem %s1479_s30, 1024  ;;  %p1481_p12 = scmp.lt.s32.totalorder %s1853_s20, %s1479_s30 }
  0x8c   : > { %v366_v25 = vld [vmem:[#allocation5 + $0x98] sm:$0xff]  ;;  %v363_v26 = vld [vmem:[#allocation5 + $0x80] sm:$0xff]  ;;  %v365_v27 = vld [vmem:[#allocation5 + $0x90] sm:$0xff]  ;;  %v1098_v28 = vpack.c.bf16 %v361_v23, %v359_v22 }
  0x8d   : > { %v368_v29 = vld [vmem:[#allocation5 + $0xa8] sm:$0xff]  ;;  %v370_v30 = vld [vmem:[#allocation5 + $0xb8] sm:$0xff]  ;;  %v536_v33 = vld [vmem:[#allocation7] sm:$0xff]  ;;  %v1100_v34 = vpack.c.bf16 %v366_v25, %v364_v24  ;;  %v1102_v45 = vpack.c.bf16 %v365_v27, %v363_v26 }
  0x8e   : > { %1091 = vmatpush1.bf16.msra.mxu0 %v1090_v14  ;;  %v537_v31 = vld [vmem:[#allocation7 + $0x8] sm:$0xff]  ;;  %v539_v32 = vld [vmem:[#allocation7 + $0x18] sm:$0xff]  ;;  %v538_v36 = vld [vmem:[#allocation7 + $0x10] sm:$0xff]  ;;  %v1104_v49 = vpack.c.bf16 %v370_v30, %v368_v29 }
  0x8f   : > { %1093 = vmatprep.subr.bf16.mxu0 %v1092_v15  ;;  %v1116_v35 = vpack.c.bf16 %v539_v32, %v537_v31  ;;  %v541_v37 = vld [vmem:[#allocation7 + $0x28] sm:$0xff]  ;;  %v543_v38 = vld [vmem:[#allocation7 + $0x38] sm:$0xff]  ;;  %v1118_v39 = vpack.c.bf16 %v538_v36, %v536_v33  ;;  %v540_v41 = vld [vmem:[#allocation7 + $0x20] sm:$0xff] }
  0x90   : > { %v1120_v40 = vpack.c.bf16 %v543_v38, %v541_v37  ;;  %v542_v42 = vld [vmem:[#allocation7 + $0x30] sm:$0xff]  ;;  %v545_v43 = vld [vmem:[#allocation7 + $0x48] sm:$0xff]  ;;  %v547_v44 = vld [vmem:[#allocation7 + $0x58] sm:$0xff] }
  0x91   : > { %1117 = vmatprep.subr.bf16.mxu1 %v1116_v35  ;;  %v367_v46 = vld [vmem:[#allocation5 + $0xa0] sm:$0xff]  ;;  %v369_v47 = vld [vmem:[#allocation5 + $0xb0] sm:$0xff]  ;;  %v1122_v48 = vpack.c.bf16 %v542_v42, %v540_v41  ;;  %v372_v50 = vld [vmem:[#allocation5 + $0xc8] sm:$0xff]  ;;  %v1124_v51 = vpack.c.bf16 %v547_v44, %v545_v43 }
  0x92   : > { %1095 = vmatpush1.bf16.msra.mxu0 %v1094_v20  ;;  %1119 = vmatpush1.bf16.msra.mxu1 %v1118_v39  ;;  %v544_v52 = vld [vmem:[#allocation7 + $0x40] sm:$0xff]  ;;  %v546_v53 = vld [vmem:[#allocation7 + $0x50] sm:$0xff]  ;;  %v374_v54 = vld [vmem:[#allocation5 + $0xd8] sm:$0xff]  ;;  %v1106_v57 = vpack.c.bf16 %v369_v47, %v367_v46 }
  0x93   : > { %1097 = vmatprep.subr.bf16.mxu0 %v1096_v21  ;;  %1121 = vmatprep.subr.bf16.mxu1 %v1120_v40  ;;  %v549_v55 = vld [vmem:[#allocation7 + $0x68] sm:$0xff]  ;;  %v551_v56 = vld [vmem:[#allocation7 + $0x78] sm:$0xff]  ;;  %v371_v58 = vld [vmem:[#allocation5 + $0xc0] sm:$0xff]  ;;  %v1126_v60 = vpack.c.bf16 %v546_v53, %v544_v52  ;;  %v1108_v61 = vpack.c.bf16 %v374_v54, %v372_v50 }
  0x94   : > { %v373_v59 = vld [vmem:[#allocation5 + $0xd0] sm:$0xff]  ;;  %v376_v62 = vld [vmem:[#allocation5 + $0xe8] sm:$0xff]  ;;  %v1128_v63 = vpack.c.bf16 %v551_v56, %v549_v55  ;;  %v548_v1 = vld [vmem:[#allocation7 + $0x60] sm:$0xff] }
  0x95   : > { %v550_v2 = vld [vmem:[#allocation7 + $0x70] sm:$0xff]  ;;  %v378_v3 = vld [vmem:[#allocation5 + $0xf8] sm:$0xff]  ;;  %v553_v4 = vld [vmem:[#allocation7 + $0x88] sm:$0xff]  ;;  %v1110_v6 = vpack.c.bf16 %v373_v59, %v371_v58 }
  0x96   : > { %1099 = vmatpush1.bf16.msra.mxu0 %v1098_v28  ;;  %1123 = vmatpush1.bf16.msra.mxu1 %v1122_v48  ;;  %v555_v5 = vld [vmem:[#allocation7 + $0x98] sm:$0xff]  ;;  %v375_v7 = vld [vmem:[#allocation5 + $0xe0] sm:$0xff]  ;;  %v1130_v8 = vpack.c.bf16 %v550_v2, %v548_v1  ;;  %v1112_v9 = vpack.c.bf16 %v378_v3, %v376_v62  ;;  %v377_v10 = vld [vmem:[#allocation5 + $0xf0] sm:$0xff] }
  0x97   : > { %1101 = vmatprep.subr.bf16.mxu0 %v1100_v34  ;;  %1125 = vmatprep.subr.bf16.mxu1 %v1124_v51  ;;  %v1132_v11 = vpack.c.bf16 %v555_v5, %v553_v4  ;;  %v552_v12 = vld [vmem:[#allocation7 + $0x80] sm:$0xff]  ;;  %v554_v13 = vld [vmem:[#allocation7 + $0x90] sm:$0xff]  ;;  %v557_v14 = vld [vmem:[#allocation7 + $0xa8] sm:$0xff]  ;;  %v1114_v16 = vpack.c.bf16 %v377_v10, %v375_v7 }
  0x98   : > { %v559_v15 = vld [vmem:[#allocation7 + $0xb8] sm:$0xff]  ;;  %v1134_v17 = vpack.c.bf16 %v554_v13, %v552_v12  ;;  %v556_v19 = vld [vmem:[#allocation7 + $0xa0] sm:$0xff]  ;;  %v558_v20 = vld [vmem:[#allocation7 + $0xb0] sm:$0xff] }
  0x99   : > { %v1136_v18 = vpack.c.bf16 %v559_v15, %v557_v14  ;;  %v561_v21 = vld [vmem:[#allocation7 + $0xc8] sm:$0xff]  ;;  %v563_v22 = vld [vmem:[#allocation7 + $0xd8] sm:$0xff]  ;;  %v343_v23 = vld [vmem:[%s1807_s15] sm:$0xff]  ;;  %v1138_v24 = vpack.c.bf16 %v558_v20, %v556_v19 }
  0x9a   : > { %1103 = vmatpush1.bf16.msra.mxu0 %v1102_v45  ;;  %1127 = vmatpush1.bf16.msra.mxu1 %v1126_v60  ;;  %v1140_v25 = vpack.c.bf16 %v563_v22, %v561_v21  ;;  %v560_v26 = vld [vmem:[#allocation7 + $0xc0] sm:$0xff]  ;;  %v562_v27 = vld [vmem:[#allocation7 + $0xd0] sm:$0xff]  ;;  %v565_v28 = vld [vmem:[#allocation7 + $0xe8] sm:$0xff]  ;;  %v381_v22 = vlaneseq }
  0x9b   : > { %1105 = vmatprep.subr.bf16.mxu0 %v1104_v49  ;;  %1129 = vmatprep.subr.bf16.mxu1 %v1128_v63  ;;  %v567_v29 = vld [vmem:[#allocation7 + $0xf8] sm:$0xff]  ;;  %v344_v30 = vld [vmem:[%s1807_s15 + $0x8] sm:$0xff]  ;;  %v1142_v31 = vpack.c.bf16 %v562_v27, %v560_v26  ;;  %v564_v33 = vld [vmem:[#allocation7 + $0xe0] sm:$0xff] }
  0x9c   : > { %v1144_v32 = vpack.c.bf16 %v567_v29, %v565_v28  ;;  %v566_v34 = vld [vmem:[#allocation7 + $0xf0] sm:$0xff]  ;;  %v346_v37 = vld [vmem:[%s1807_s15 + $0x18] sm:$0xff]  ;;  %v569_v38 = vld [vmem:[#allocation7 + $0x108] sm:$0xff] }
  0x9d   : > { %v345_v35 = vld [vmem:[%s1807_s15 + $0x10] sm:$0xff]  ;;  %v1146_v36 = vpack.c.bf16 %v566_v34, %v564_v33  ;;  %v571_v39 = vld [vmem:[#allocation7 + $0x118] sm:$0xff]  ;;  %v568_v41 = vld [vmem:[#allocation7 + $0x100] sm:$0xff]  ;;  %s1474_s15 = scalar_lea.vmem %s1853_s20, 512 }
  0x9e   : > { %1107 = vmatpush1.bf16.msra.mxu0 %v1106_v57  ;;  %1131 = vmatpush1.bf16.msra.mxu1 %v1130_v8  ;;  %v1148_v40 = vpack.c.bf16 %v571_v39, %v569_v38  ;;  %v570_v42 = vld [vmem:[#allocation7 + $0x110] sm:$0xff]  ;;  %v573_v44 = vld [vmem:[#allocation7 + $0x128] sm:$0xff]  ;;  %v575_v45 = vld [vmem:[#allocation7 + $0x138] sm:$0xff]  ;;  %p1475_p10 = scmp.ne.s32.totalorder %s1853_s20, %s1474_s15  ;;  %p1482_p2 = scmp.lt.s32.totalorder %s1480_s9, %s1474_s15 }
  0x9f   : > { %1109 = vmatprep.subr.bf16.mxu0 %v1108_v61  ;;  %1133 = vmatprep.subr.bf16.mxu1 %v1132_v11  ;;  %v1150_v43 = vpack.c.bf16 %v570_v42, %v568_v41  ;;  %v1152_v46 = vpack.c.bf16 %v575_v45, %v573_v44  ;;  %v572_v47 = vld [vmem:[#allocation7 + $0x120] sm:$0xff]  ;;  %v574_v48 = vld [vmem:[#allocation7 + $0x130] sm:$0xff]  ;;  %v579_v50 = vld [vmem:[#allocation7 + $0x158] sm:$0xff] }
  0xa0   : > { %v1154_v49 = vpack.c.bf16 %v574_v48, %v572_v47  ;;  %v576_v52 = vld [vmem:[#allocation7 + $0x140] sm:$0xff]  ;;  %v578_v53 = vld [vmem:[#allocation7 + $0x150] sm:$0xff]  ;;  %v581_v55 = vld [vmem:[#allocation7 + $0x168] sm:$0xff]  ;;  %p1476_p3 = pnand %p1475_p10, %p1750_p5  ;;  %p1483_p1 = por %p1482_p2, %p1481_p12 }
  0xa1   : > { %v1158_v54 = vpack.c.bf16 %v578_v53, %v576_v52  ;;  %v583_v56 = vld [vmem:[#allocation7 + $0x178] sm:$0xff]  ;;  %v580_v58 = vld [vmem:[#allocation7 + $0x160] sm:$0xff]  ;;  %v582_v59 = vld [vmem:[#allocation7 + $0x170] sm:$0xff] }
  0xa2   : > { %1111 = vmatpush1.bf16.msra.mxu0 %v1110_v6  ;;  %1135 = vmatpush1.bf16.msra.mxu1 %v1134_v17  ;;  %v1160_v57 = vpack.c.bf16 %v583_v56, %v581_v55  ;;  %v1162_v60 = vpack.c.bf16 %v582_v59, %v580_v58  ;;  %v585_v61 = vld [vmem:[#allocation7 + $0x188] sm:$0xff]  ;;  %v587_v62 = vld [vmem:[#allocation7 + $0x198] sm:$0xff]  ;;  %v584_v1 = vld [vmem:[#allocation7 + $0x180] sm:$0xff]  ;;  %p1477_p7 = pneg %p1476_p3 }
  0xa3   : > { %1113 = vmatprep.subr.bf16.mxu0 %v1112_v9  ;;  %1137 = vmatprep.subr.bf16.mxu1 %v1136_v18  ;;  %v1164_v63 = vpack.c.bf16 %v587_v62, %v585_v61  ;;  %v586_v2 = vld [vmem:[#allocation7 + $0x190] sm:$0xff]  ;;  %v589_v4 = vld [vmem:[#allocation7 + $0x1a8] sm:$0xff]  ;;  %v591_v5 = vld [vmem:[#allocation7 + $0x1b8] sm:$0xff] }
  0xa4   : > { %v1166_v3 = vpack.c.bf16 %v586_v2, %v584_v1  ;;  %v1168_v6 = vpack.c.bf16 %v591_v5, %v589_v4  ;;  %v588_v7 = vld [vmem:[#allocation7 + $0x1a0] sm:$0xff]  ;;  %v590_v8 = vld [vmem:[#allocation7 + $0x1b0] sm:$0xff]  ;;  %v593_v10 = vld [vmem:[#allocation7 + $0x1c8] sm:$0xff]  ;;  %p1484_p4 = pnand %p1483_p1, %p1477_p7 }
  0xa5   : > { %v1170_v9 = vpack.c.bf16 %v590_v8, %v588_v7  ;;  %v595_v11 = vld [vmem:[#allocation7 + $0x1d8] sm:$0xff]  ;;  %v592_v13 = vld [vmem:[#allocation7 + $0x1c0] sm:$0xff]  ;;  %v594_v14 = vld [vmem:[#allocation7 + $0x1d0] sm:$0xff] }
  0xa6   : > { %1115 = vmatpush1.bf16.msra.mxu0 %v1114_v16  ;;  %1139 = vmatpush1.bf16.msra.mxu1 %v1138_v24  ;;  %v1172_v12 = vpack.c.bf16 %v595_v11, %v593_v10  ;;  %v1174_v15 = vpack.c.bf16 %v594_v14, %v592_v13  ;;  %v597_v16 = vld [vmem:[#allocation7 + $0x1e8] sm:$0xff]  ;;  %v599_v17 = vld [vmem:[#allocation7 + $0x1f8] sm:$0xff]  ;;  %v596_v19 = vld [vmem:[#allocation7 + $0x1e0] sm:$0xff] }
  0xa7   : > { %1141 = vmatprep.subr.bf16.mxu1 %v1140_v25  ;;  %v1176_v18 = vpack.c.bf16 %v599_v17, %v597_v16  ;;  %v598_v20 = vld [vmem:[#allocation7 + $0x1f0] sm:$0xff]  ;;  %v379_v25 = vld [vmem:[%s1904_s2] sm:$0x3] }
  0xa8   : > { %v1178_v21 = vpack.c.bf16 %v598_v20, %v596_v19 }
  0xa9   : > { %456 = vmatmul.mubr.f32.vlgmr.msra.gmra.mrb[0].mxu0 %v343_v23  ;;  %v1829_v23 = vshrl.u32 %v381_v22, 7  ;;  %v774_v22 = vld [vmem:[#allocation8 + $0x88] sm:$0xff] }
  0xaa   : > { %461 = vmatprep.mubr.f32.mxu0 %v1558_v0  ;;  %1143 = vmatpush1.bf16.msra.mxu1 %v1142_v31 }
  0xab   : > { %1145 = vmatprep.subr.bf16.mxu1 %v1144_v32  ;;  %v383_v24 = vsub.s32 0, %v1829_v23  ;;  %v387_v26 = vsub.s32 1, %v1829_v23 }
  0xad   : > { %462 = vmatmul.mubr.f32.gmra.mrb[2].mxu0 %v344_v30  ;;  %v384_v27 = vrot.slane %v379_v25, %v383_v24  ;;  %v388_v28 = vrot.slane %v379_v25, %v387_v26 }
  0xae   : > { %467 = vmatprep.mubr.f32.mxu0 %v1558_v0  ;;  %1147 = vmatpush1.bf16.msra.mxu1 %v1146_v36 }
  0xaf   : > { %1149 = vmatprep.subr.bf16.mxu1 %v1148_v40 }
  0xb1   : > { %468 = vmatmul.mubr.f32.gmra.mrb[4].mxu0 %v345_v35 }
  0xb2   : > { %473 = vmatprep.mubr.f32.mxu0 %v1558_v0  ;;  %1151 = vmatpush1.bf16.msra.mxu1 %v1150_v43  ;;  %v577_v0 = vld [vmem:[#allocation7 + $0x148] sm:$0xff] }
  0xb3   : > { %1153 = vmatprep.subr.bf16.mxu1 %v1152_v46  ;;  %v1156_v51 = vpack.c.bf16 %v579_v50, %v577_v0 }
  0xb5   : > { %474 = vmatmul.mubr.f32.gmra.mrb[6].mxu0 %v346_v37 }
  0xb6   : > { %1155 = vmatpush1.bf16.msra.mxu1 %v1154_v49 }
  0xb7   : > { %1157 = vmatprep.subr.bf16.mxu1 %v1156_v51 }
  0xba   : > { %1159 = vmatpush1.bf16.msra.mxu1 %v1158_v54 }
  0xbb   : > { %1161 = vmatprep.subr.bf16.mxu1 %v1160_v57 }
  0xbe   : > { %1163 = vmatpush1.bf16.msra.mxu1 %v1162_v60 }
  0xbf   : > { %1165 = vmatprep.subr.bf16.mxu1 %v1164_v63 }
  0xc2   : > { %1167 = vmatpush1.bf16.msra.mxu1 %v1166_v3 }
  0xc3   : > { %1169 = vmatprep.subr.bf16.mxu1 %v1168_v6 }
  0xc6   : > { %1171 = vmatpush1.bf16.msra.mxu1 %v1170_v9 }
  0xc7   : > { %1173 = vmatprep.subr.bf16.mxu1 %v1172_v12 }
  0xca   : > { %1175 = vmatpush1.bf16.msra.mxu1 %v1174_v15 }
  0xcb   : > { %1177 = vmatprep.subr.bf16.mxu1 %v1176_v18 }
  0xce   : > { %1179 = vmatpush1.bf16.msra.mxu1 %v1178_v21  ;;  %v773_v21 = vld [vmem:[#allocation8 + $0x80] sm:$0xff] }
  0xcf   : > { %v1180_v25 = vpack.c.bf16 %v774_v22, %v773_v21 }
  0xd1   : > { %1181 = vmatprep.subr.bf16.mxu0 %v1180_v25 }
 0x17c   : > { %v457_v29 = vpop.f32.mrb[0].mxu0 }
 0x17d   : > { %v458_v30 = vadd.f32 %v457_v29, %v384_v27  ;;  %v459_v31 = vpop.f32.mrb[1].mxu0 }
 0x17e   : > { %v460_v32 = vadd.f32 %v459_v31, %v388_v28  ;;  %v776_v31 = vld [vmem:[#allocation8 + $0x98] sm:$0xff] }
 0x17f   : > { %v1016_v33 = vmul.f32 -1.442695, %v458_v30 }
 0x180   : > { %v1017_v34 = vmul.f32 -1.442695, %v460_v32  ;;  %v463_v35 = vpop.f32.mrb[2].mxu0 }
 0x181   : > { %1296 = vpow2.f32 %v1016_v33  ;;  %v464_v36 = vadd.f32 %v463_v35, %v384_v27  ;;  %v465_v37 = vpop.f32.mrb[3].mxu0  ;;  %v759_v33 = vld [vmem:[#allocation8 + $0x10] sm:$0xff] }
 0x182   : > { %1298 = vpow2.f32 %v1017_v34  ;;  %v466_v38 = vadd.f32 %v465_v37, %v388_v28  ;;  %v760_v34 = vld [vmem:[#allocation8 + $0x18] sm:$0xff]  ;;  %v778_v37 = vld [vmem:[#allocation8 + $0xa8] sm:$0xff] }
 0x183   : > { %v1018_v39 = vmul.f32 -1.442695, %v464_v36  ;;  %v1186_v35 = vpack.c.bf16 %v760_v34, %v759_v33 }
 0x184   : > { %v1019_v40 = vmul.f32 -1.442695, %v466_v38  ;;  %v469_v41 = vpop.f32.mrb[4].mxu0 }
 0x185   : > { %1300 = vpow2.f32 %v1018_v39  ;;  %v470_v42 = vadd.f32 %v469_v41, %v384_v27  ;;  %v471_v43 = vpop.f32.mrb[5].mxu0  ;;  %v761_v39 = vld [vmem:[#allocation8 + $0x20] sm:$0xff] }
 0x186   : > { %1302 = vpow2.f32 %v1019_v40  ;;  %v472_v44 = vadd.f32 %v471_v43, %v388_v28  ;;  %v762_v40 = vld [vmem:[#allocation8 + $0x28] sm:$0xff]  ;;  %v780_v43 = vld [vmem:[#allocation8 + $0xb8] sm:$0xff] }
 0x187   : > { %v1020_v45 = vmul.f32 -1.442695, %v470_v42  ;;  %v1190_v41 = vpack.c.bf16 %v762_v40, %v761_v39 }
 0x188   : > { %v1021_v46 = vmul.f32 -1.442695, %v472_v44  ;;  %v475_v47 = vpop.f32.mrb[6].mxu0 }
 0x189   : > { %1304 = vpow2.f32 %v1020_v45  ;;  %v476_v48 = vadd.f32 %v475_v47, %v384_v27  ;;  %v477_v49 = vpop.f32.mrb[7].mxu0  ;;  %v757_v27 = vld [vmem:[#allocation8] sm:$0xff]  ;;  %v763_v45 = vld [vmem:[#allocation8 + $0x30] sm:$0xff] }
 0x18a   : > { %1306 = vpow2.f32 %v1021_v46  ;;  %v478_v0 = vadd.f32 %v477_v49, %v388_v28  ;;  %v758_v28 = vld [vmem:[#allocation8 + $0x8] sm:$0xff]  ;;  %v764_v46 = vld [vmem:[#allocation8 + $0x38] sm:$0xff] }
 0x18b   : > { %v1297_v50 = vpop.eup %1296  ;;  %v1022_v51 = vmul.f32 -1.442695, %v476_v48  ;;  %v1182_v29 = vpack.c.bf16 %v758_v28, %v757_v27  ;;  %v1194_v47 = vpack.c.bf16 %v764_v46, %v763_v45  ;;  %v782_v49 = vld [vmem:[#allocation8 + $0xc8] sm:$0xff] }
 0x18c   : > { %v1299_v52 = vpop.eup %1298  ;;  %v504_v53 = vadd.f32 1.0, %v1297_v50  ;;  %v1023_v54 = vmul.f32 -1.442695, %v478_v0  ;;  %v765_v50 = vld [vmem:[#allocation8 + $0x40] sm:$0xff] }
 0x18d   : > { %v505_v55 = vadd.f32 1.0, %v1299_v52  ;;  %1308 = vpow2.f32 %v1022_v51  ;;  %1183 = vmatpush3.bf16.msra.mxu0 %v1182_v29  ;;  %v766_v51 = vld [vmem:[#allocation8 + $0x48] sm:$0xff] }
 0x18e   : > { %1310 = vrcp.f32 %v504_v53  ;;  %v1198_v52 = vpack.c.bf16 %v766_v51, %v765_v50  ;;  %v783_v53 = vld [vmem:[#allocation8 + $0xd0] sm:$0xff] }
 0x18f   : > { %v1301_v56 = vpop.eup %1300  ;;  %1312 = vrcp.f32 %v505_v55 }
 0x190   : > { %v1303_v57 = vpop.eup %1302  ;;  %v506_v58 = vadd.f32 1.0, %v1301_v56  ;;  %1314 = vpow2.f32 %v1023_v54  ;;  %v784_v54 = vld [vmem:[#allocation8 + $0xd8] sm:$0xff]  ;;  %v767_v56 = vld [vmem:[#allocation8 + $0x50] sm:$0xff] }
 0x191   : > { %v507_v59 = vadd.f32 1.0, %v1303_v57  ;;  %v1200_v55 = vpack.c.bf16 %v784_v54, %v783_v53  ;;  %v768_v57 = vld [vmem:[#allocation8 + $0x58] sm:$0xff] }
 0x192   : > { %1316 = vrcp.f32 %v506_v58  ;;  %v1202_v58 = vpack.c.bf16 %v768_v57, %v767_v56 }
 0x193   : > { %v1305_v60 = vpop.eup %1304  ;;  %1318 = vrcp.f32 %v507_v59  ;;  %v785_v59 = vld [vmem:[#allocation8 + $0xe0] sm:$0xff] }
 0x194   : > { %v1307_v61 = vpop.eup %1306  ;;  %v508_v62 = vadd.f32 1.0, %v1305_v60  ;;  %v786_v60 = vld [vmem:[#allocation8 + $0xe8] sm:$0xff] }
 0x195   : > { %v509_v63 = vadd.f32 1.0, %v1307_v61  ;;  %v1204_v61 = vpack.c.bf16 %v786_v60, %v785_v59 }
 0x196   : > { %1320 = vrcp.f32 %v508_v62  ;;  %v769_v62 = vld [vmem:[#allocation8 + $0x60] sm:$0xff] }
 0x197   : > { %v1309_v1 = vpop.eup %1308  ;;  %1322 = vrcp.f32 %v509_v63  ;;  %v770_v63 = vld [vmem:[#allocation8 + $0x68] sm:$0xff] }
 0x198   : > { %v1311_v2 = vpop.eup %1310  ;;  %v510_v3 = vadd.f32 1.0, %v1309_v1  ;;  %v1206_v1 = vpack.c.bf16 %v770_v63, %v769_v62 }
 0x199   : > { %v1313_v4 = vpop.eup %1312  ;;  %v528_v7 = vmul.f32 %v1311_v2, %v458_v30  ;;  %v775_v30 = vld [vmem:[#allocation8 + $0x90] sm:$0xff] }
 0x19a   : > { %v1315_v5 = vpop.eup %1314  ;;  %v529_v6 = vmul.f32 %v1313_v4, %v460_v32  ;;  %1324 = vrcp.f32 %v510_v3  ;;  %v1184_v32 = vpack.c.bf16 %v776_v31, %v775_v30  ;;  %v787_v2 = vld [vmem:[#allocation8 + $0xf0] sm:$0xff]  ;;  %v788_v3 = vld [vmem:[#allocation8 + $0xf8] sm:$0xff] }
 0x19b   : > { %v511_v8 = vadd.f32 1.0, %v1315_v5  ;;  %v1208_v4 = vpack.c.bf16 %v788_v3, %v787_v2  ;;  %v771_v5 = vld [vmem:[#allocation8 + $0x70] sm:$0xff] }
 0x19c   : > { %v1317_v9 = vpop.eup %1316  ;;  %676 = vmatprep.mubr.f32.mxu1 %v529_v6  ;;  %1185 = vmatprep.subr.bf16.mxu0 %v1184_v32  ;;  %v772_v6 = vld [vmem:[#allocation8 + $0x78] sm:$0xff] }
 0x19d   : > { %v1319_v10 = vpop.eup %1318  ;;  %1326 = vrcp.f32 %v511_v8  ;;  %677 = vmatmul.mubr.f32.vlgmr.msra.gmra.mrb[0].mxu1 %v528_v7  ;;  %v530_v12 = vmul.f32 %v1317_v9, %v464_v36  ;;  %1187 = vmatpush3.bf16.msra.mxu0 %v1186_v35  ;;  %v777_v36 = vld [vmem:[#allocation8 + $0xa0] sm:$0xff]  ;;  %v1210_v7 = vpack.c.bf16 %v772_v6, %v771_v5 }
 0x19e   : > { %v531_v11 = vmul.f32 %v1319_v10, %v466_v38  ;;  %v1188_v38 = vpack.c.bf16 %v778_v37, %v777_v36  ;;  %v600_v8 = vld [vmem:[%s1906_s4] sm:$0x3] }
 0x19f   : > { %v605_v9 = vrot.slane %v600_v8, %v383_v24  ;;  %v609_v10 = vrot.slane %v600_v8, %v387_v26 }
 0x1a0   : > { %v1321_v13 = vpop.eup %1320  ;;  %682 = vmatprep.mubr.f32.mxu1 %v531_v11  ;;  %1189 = vmatprep.subr.bf16.mxu0 %v1188_v38 }
 0x1a1   : > { %v1323_v14 = vpop.eup %1322  ;;  %683 = vmatmul.mubr.f32.gmra.mrb[2].mxu1 %v530_v12  ;;  %v532_v16 = vmul.f32 %v1321_v13, %v470_v42  ;;  %1191 = vmatpush3.bf16.msra.mxu0 %v1190_v41  ;;  %v779_v42 = vld [vmem:[#allocation8 + $0xb0] sm:$0xff] }
 0x1a2   : > { %v533_v15 = vmul.f32 %v1323_v14, %v472_v44  ;;  %v1192_v44 = vpack.c.bf16 %v780_v43, %v779_v42 }
 0x1a4   : > { %688 = vmatprep.mubr.f32.mxu1 %v533_v15  ;;  %v1325_v17 = vpop.eup %1324  ;;  %1193 = vmatprep.subr.bf16.mxu0 %v1192_v44 }
 0x1a5   : > { %689 = vmatmul.mubr.f32.gmra.mrb[4].mxu1 %v532_v16  ;;  %v534_v20 = vmul.f32 %v1325_v17, %v476_v48  ;;  %1195 = vmatpush3.bf16.msra.mxu0 %v1194_v47  ;;  %v781_v48 = vld [vmem:[#allocation8 + $0xc0] sm:$0xff] }
 0x1a7   : > { %v1327_v18 = vpop.eup %1326 }
 0x1a8   : > { %v535_v19 = vmul.f32 %v1327_v18, %v478_v0  ;;  %v1196_v0 = vpack.c.bf16 %v782_v49, %v781_v48 }
 0x1aa   : > { %694 = vmatprep.mubr.f32.mxu1 %v535_v19  ;;  %1197 = vmatprep.subr.bf16.mxu0 %v1196_v0 }
 0x1ab   : > { %695 = vmatmul.mubr.f32.gmra.mrb[6].mxu1 %v534_v20  ;;  %1199 = vmatpush3.bf16.msra.mxu0 %v1198_v52 }
 0x1ac   : > { %1201 = vmatprep.subr.bf16.mxu0 %v1200_v55 }
 0x1af   : > { %1203 = vmatpush3.bf16.msra.mxu0 %v1202_v58 }
 0x1b0   : > { %1205 = vmatprep.subr.bf16.mxu0 %v1204_v61 }
 0x1b3   : > { %1207 = vmatpush3.bf16.msra.mxu0 %v1206_v1 }
 0x1b4   : > { %1209 = vmatprep.subr.bf16.mxu0 %v1208_v4  ;;  %v1032_v4 = vld [vmem:[%s1908_s6] ss:$0 sm:$0xff] }
 0x1b7   : > { %1211 = vmatpush3.bf16.msra.mxu0 %v1210_v7 }
 0x270   : > { %v678_v11 = vpop.f32.mrb[0].mxu1 }
 0x271   : > { %v679_v12 = vadd.f32 %v678_v11, %v605_v9  ;;  %v680_v13 = vpop.f32.mrb[1].mxu1 }
 0x272   : > { %v681_v14 = vadd.f32 %v680_v13, %v609_v10 }
 0x273   : > { %v1024_v15 = vmul.f32 -1.442695, %v679_v12 }
 0x274   : > { %v1025_v16 = vmul.f32 -1.442695, %v681_v14  ;;  %v684_v17 = vpop.f32.mrb[2].mxu1 }
 0x275   : > { %1328 = vpow2.f32 %v1024_v15  ;;  %v685_v18 = vadd.f32 %v684_v17, %v605_v9  ;;  %v686_v19 = vpop.f32.mrb[3].mxu1 }
 0x276   : > { %1330 = vpow2.f32 %v1025_v16  ;;  %v687_v20 = vadd.f32 %v686_v19, %v609_v10 }
 0x277   : > { %v1026_v21 = vmul.f32 -1.442695, %v685_v18 }
 0x278   : > { %v1027_v22 = vmul.f32 -1.442695, %v687_v20  ;;  %v690_v25 = vpop.f32.mrb[4].mxu1 }
 0x279   : > { %1332 = vpow2.f32 %v1026_v21  ;;  %v691_v24 = vadd.f32 %v690_v25, %v605_v9  ;;  %v692_v27 = vpop.f32.mrb[5].mxu1 }
 0x27a   : > { %1334 = vpow2.f32 %v1027_v22  ;;  %v693_v23 = vadd.f32 %v692_v27, %v609_v10 }
 0x27b   : > { %v1028_v26 = vmul.f32 -1.442695, %v691_v24 }
 0x27c   : > { %v1029_v28 = vmul.f32 -1.442695, %v693_v23 }
 0x27d   : > { %1336 = vpow2.f32 %v1028_v26 }
 0x27e   : > { %1338 = vpow2.f32 %v1029_v28  ;;  %v696_v29 = vpop.f32.mrb[6].mxu1 }
 0x27f   : > { %v1329_v30 = vpop.eup %1328  ;;  %v697_v31 = vadd.f32 %v696_v29, %v605_v9  ;;  %v698_v32 = vpop.f32.mrb[7].mxu1 }
 0x280   : > { %v1331_v33 = vpop.eup %1330  ;;  %v725_v34 = vadd.f32 1.0, %v1329_v30  ;;  %v699_v35 = vadd.f32 %v698_v32, %v609_v10 }
 0x281   : > { %v726_v36 = vadd.f32 1.0, %v1331_v33  ;;  %v1030_v37 = vmul.f32 -1.442695, %v697_v31 }
 0x282   : > { %1340 = vrcp.f32 %v725_v34  ;;  %v1031_v38 = vmul.f32 -1.442695, %v699_v35 }
 0x283   : > { %v1333_v39 = vpop.eup %1332  ;;  %1342 = vrcp.f32 %v726_v36 }
 0x284   : > { %v1335_v40 = vpop.eup %1334  ;;  %v727_v41 = vadd.f32 1.0, %v1333_v39  ;;  %1344 = vpow2.f32 %v1030_v37 }
 0x285   : > { %v728_v42 = vadd.f32 1.0, %v1335_v40  ;;  %1346 = vpow2.f32 %v1031_v38 }
 0x286   : > { %1348 = vrcp.f32 %v727_v41 }
 0x287   : > { %v1337_v43 = vpop.eup %1336  ;;  %1350 = vrcp.f32 %v728_v42 }
 0x288   : > { %v1339_v44 = vpop.eup %1338  ;;  %v729_v45 = vadd.f32 1.0, %v1337_v43 }
 0x289   : > { %v730_v46 = vadd.f32 1.0, %v1339_v44 }
 0x28a   : > { %1352 = vrcp.f32 %v729_v45 }
 0x28b   : > { %1354 = vrcp.f32 %v730_v46 }
 0x28c   : > { %v1341_v47 = vpop.eup %1340 }
 0x28d   : > { %v1343_v48 = vpop.eup %1342  ;;  %v749_v51 = vmul.f32 %v1341_v47, %v679_v12 }
 0x28e   : > { %v1345_v49 = vpop.eup %1344  ;;  %v750_v0 = vmul.f32 %v1343_v48, %v681_v14 }
 0x28f   : > { %v1347_v50 = vpop.eup %1346  ;;  %v731_v52 = vadd.f32 1.0, %v1345_v49 }
 0x290   : > { %v1349_v53 = vpop.eup %1348  ;;  %v732_v54 = vadd.f32 1.0, %v1347_v50  ;;  %860 = vmatprep.mubr.f32.mxu0 %v750_v0 }
 0x291   : > { %v1351_v55 = vpop.eup %1350  ;;  %1356 = vrcp.f32 %v731_v52  ;;  %861 = vmatmul.mubr.f32.vlgmr.msra.gmra.mrb[8].mxu0 %v749_v51  ;;  %v751_v57 = vmul.f32 %v1349_v53, %v685_v18 }
 0x292   : > { %v752_v56 = vmul.f32 %v1351_v55, %v687_v20  ;;  %1358 = vrcp.f32 %v732_v54 }
 0x294   : > { %v1353_v58 = vpop.eup %1352  ;;  %865 = vmatprep.mubr.f32.mxu0 %v752_v56 }
 0x295   : > { %v1355_v59 = vpop.eup %1354  ;;  %866 = vmatmul.mubr.f32.gmra.mrb[10].mxu0 %v751_v57  ;;  %v753_v61 = vmul.f32 %v1353_v58, %v691_v24 }
 0x296   : > { %v754_v60 = vmul.f32 %v1355_v59, %v693_v23 }
 0x298   : > { %870 = vmatprep.mubr.f32.mxu0 %v754_v60 }
 0x299   : > { %871 = vmatmul.mubr.f32.gmra.mrb[12].mxu0 %v753_v61 }
 0x29b   : > { %v1357_v62 = vpop.eup %1356 }
 0x29c   : > { %v1359_v63 = vpop.eup %1358  ;;  %v755_v2 = vmul.f32 %v1357_v62, %v697_v31 }
 0x29d   : > { %v756_v1 = vmul.f32 %v1359_v63, %v699_v35 }
 0x29f   : > { %875 = vmatprep.mubr.f32.mxu0 %v756_v1 }
 0x2a0   : > { %876 = vmatmul.mubr.f32.gmra.mrb[14].mxu0 %v755_v2 }
 0x364   : > { %v1072_v3 = vpop.f32.mrb[8].mxu0 }
 0x365   : > { %v1073_v5 = vpop.f32.mrb[9].mxu0 }
 0x366   : > { %v1074_v6 = vadd.f32 %v1073_v5, %v1072_v3 }
 0x368   : > { %v863_v7 = vadd.f32 %v1074_v6, %v1032_v4  ;;  %v1075_v8 = vpop.f32.mrb[10].mxu0 }
 0x369   : > { %v1076_v9 = vpop.f32.mrb[11].mxu0 }
 0x36a   : > { %881 = vst [vmem:[%s340_s17] sm:$0xff] %v863_v7  ;;  %v1077_v10 = vadd.f32 %v1076_v9, %v1075_v8 }
 0x36c   : > { %v868_v11 = vadd.f32 %v1077_v10, %v1032_v4  ;;  %v1078_v12 = vpop.f32.mrb[12].mxu0 }
 0x36d   : > { %v1079_v13 = vpop.f32.mrb[13].mxu0 }
 0x36e   : > { %882 = vst [vmem:[%s340_s17 + $0x8] sm:$0xff] %v868_v11  ;;  %v1080_v14 = vadd.f32 %v1079_v13, %v1078_v12 }
 0x370   : > { %v873_v15 = vadd.f32 %v1080_v14, %v1032_v4 }
 0x372   : > { %883 = vst [vmem:[%s340_s17 + $0x10] sm:$0xff] %v873_v15 }
 0x373   : > { %v1081_v16 = vpop.f32.mrb[14].mxu0 }
 0x374   : > { %v1082_v17 = vpop.f32.mrb[15].mxu0 }
 0x375   : > { %v1083_v18 = vadd.f32 %v1082_v17, %v1081_v16 }
 0x377   : > { %v878_v19 = vadd.f32 %v1083_v18, %v1032_v4 }
 0x379   : > { %884 = vst [vmem:[%s340_s17 + $0x18] sm:$0xff] %v878_v19 }
 0x37a   : > { %1487 = shalt.err (!%p1484_p4)
}
 0x37b   : > { %s1488_s14 = scalar_lea.hbm %s1858_s23, 512  ;;  %s1492_s13 = scalar_lea.hbm %s1909_s7, 1024 }
 0x37c   : > { %p1489_p9 = scmp.ne.s32.totalorder %s1858_s23, %s1488_s14  ;;  %p1493_p8 = scmp.lt.u32.totalorder %s1858_s23, %s1909_s7 }
 0x37d   : > { %p1494_p13 = scmp.lt.u32.totalorder %s1492_s13, %s1488_s14  ;;  %p1496_p10 = scmp.lt.u32.totalorder %s1488_s14, %s1858_s23 }
 0x37e   : > { %p1490_p0 = pnand %p1489_p9, %p1750_p5 }
 0x37f   : > { %p1495_p6 = por %p1494_p13, %p1493_p8 }
 0x380   : > { %p1491_p11 = pneg %p1490_p0 }
 0x381   : > { %p1497_p3 = por %p1496_p10, %p1495_p6 }
 0x383   : > { %p1498_p7 = pnand %p1497_p3, %p1491_p11 }
 0x385   : > { %1501 = shalt.err (!%p1498_p7)
}
 0x386   : > { %s1560_s16 = smov 128   ;;  %s1561_s29 = smov 8  }
 0x387   : > { %1226 = dma.vmem_to_hbm [thread:$0]  (%p1750_p5), %s1853_s20, 512, %s1858_s23, %s886_s11, %s1560_s16, %s1560_s16, %s1561_s29  }
 0x388 PF: > { %s1929_s15 = sld [smem:[#allocation15_spill]]  ;;  %s914_s28 = sand.u32 1, %s1536_s24  }
 0x389   : > { %p1931_p2 = scmp.ge.s32.totalorder %s1548_s27, 2  ;;  %s915_s30 = scalar_lea.sflag [#allocation4], %s914_s28 }
 0x38e   : > { %p1930_p12 = scmp.ne.s32.totalorder %s1929_s15, 0 }
 0x390   : > { %p1243_p1 = pnand %p1931_p2, %p1930_p12 }
 0x392   : > { %1531 = dma.done.wait (!%p1243_p1), %s915_s30, 512  }
 0x393   : > { %1533 = vsyncadd (!%p1243_p1), %s915_s30, 4294966784  ;;  %p22_p4 = scmp.ge.s32.totalorder %s1736_s8, 4   ;;  %s1932_s24 = smov %s1540_s25 }
 0x394   : > { %s1933_s25 = smov %s1544_s26  ;;  %s1934_s26 = smov %s1746_s19 }
 0x395   : > { %s1935_s27 = smov %s1736_s8  ;;  %24 = sbr.rel (!%p22_p4) target bundleno = 7 (0x7), region = 105 }
 0x39c   :  { %920 = vsyncpa [#allocation3], 1 }
 0x39d   :  { %922 = vsyncpa [#allocation3 + $0x1], 1 }
 0x39e   :  { %923 = vsyncpa [#allocation6], 1 }
 0x39f   :  { %924 = vsyncpa [#allocation9], 1 }
 0x3a0   :  { %925 = vsyncpa [#allocation4], 1 }
 0x3a1   :  { %927 = vsyncpa [#allocation4 + $0x1], 1 }

</bundles_post_ra>
